<compile_context>
chip_gen: v5e
topology: v5e:2x2
jax: 0.10.0
libtpu: 0.0.40
codegen_flags: <defaults>
</compile_context>

<pallas_src>
import jax
import jax.numpy as jnp
from jax.experimental import pallas as pl
from jax.experimental.pallas import tpu as pltpu

BN_EPS = 1e-5  # PyTorch BatchNorm2d default eps


def _round_up(a, b):
    return (a + b - 1) // b * b


def _hw_config():
    """Generation-aware VMEM budget (v7x: 64 MiB/TC; v5e/v6e: 128 MiB)."""
    vmem_cap = 64 * 1024 * 1024
    try:
        info = pltpu.get_tpu_info()
        vmem_cap = int(getattr(info, "vmem_capacity_bytes", vmem_cap))
    except Exception:
        pass
    if vmem_cap >= 100 * 1024 * 1024:
        # v5e / v6e: 128 MiB physical VMEM -> bigger blocks, higher limit.
        return {
            "vmem_limit_bytes": 64 * 1024 * 1024,
            "fused_max_x_bytes": 14 * 1024 * 1024,     # padded x bytes
            "block_budget_elems": 2 * 1024 * 1024,     # ~8 MiB f32 blocks
        }
    # v7x: 64 MiB per TensorCore -> stay well under the physical limit.
    return {
        "vmem_limit_bytes": 48 * 1024 * 1024,
        "fused_max_x_bytes": 10 * 1024 * 1024,
        "block_budget_elems": 1024 * 1024,             # ~4 MiB f32 blocks
    }


def _lane_tile(l_total, c, budget_elems):
    """Lane-axis tile: multiple of 128 with c*tl <= budget, or full extent."""
    if l_total <= 128:
        return l_total
    tl = (budget_elems // max(c, 1)) // 128 * 128
    tl = max(tl, 128)
    if tl >= l_total:
        return l_total        # full extent is always a legal block dim
    return tl                  # multiple of 128; partial edge handled by cdiv+mask


# ------------------------- fused single-pass kernel -------------------------

def _make_fused_kernel(n_total, l_total):
    inv_count = 1.0 / float(n_total * l_total)

    def kernel(x_ref, gamma_ref, beta_ref, o_ref):
        x = x_ref[...].astype(jnp.float32)                  # (N, C, L)
        s = jnp.sum(x, axis=2, keepdims=True)               # (N, C, 1)
        sq = jnp.sum(x * x, axis=2, keepdims=True)          # (N, C, 1)
        s = jnp.sum(s, axis=0, keepdims=True)                # (1, C, 1)
        sq = jnp.sum(sq, axis=0, keepdims=True)              # (1, C, 1)
        mean = s * inv_count
        var = jnp.maximum(sq * inv_count - mean * mean, 0.0)  # biased batch var
        inv_std = jax.lax.rsqrt(var + BN_EPS)
        scale = gamma_ref[...] * inv_std                     # (1, C, 1)
        shift = beta_ref[...] - mean * scale                 # (1, C, 1)
        y = x * scale + shift
        o_ref[...] = jnp.maximum(y, 0.0).astype(o_ref.dtype)

    return kernel


# --------------------------- tiled two-pass kernels --------------------------

def _make_stats_kernel(l_total, tl):
    need_mask = (l_total % tl) != 0

    def kernel(x_ref, sum_ref, sumsq_ref):
        @pl.when(pl.program_id(1) == 0)
        def _init():
            sum_ref[...] = jnp.zeros_like(sum_ref)
            sumsq_ref[...] = jnp.zeros_like(sumsq_ref)

        x = x_ref[...].astype(jnp.float32)                   # (1, C, tl)
        if need_mask:
            lane0 = pl.program_id(1) * tl
            lane = lane0 + jax.lax.broadcasted_iota(jnp.int32, x.shape, 2)
            x = jnp.where(lane < l_total, x, 0.0)
        sum_ref[...] += jnp.sum(x, axis=2, keepdims=True)
        sumsq_ref[...] += jnp.sum(x * x, axis=2, keepdims=True)

    return kernel


def _apply_kernel(x_ref, scale_ref, shift_ref, o_ref):
    # Fused per-element mul + add + relu; scale/shift are (1, C, 1) per-channel.
    y = x_ref[...].astype(jnp.float32) * scale_ref[...] + shift_ref[...]
    o_ref[...] = jnp.maximum(y, 0.0).astype(o_ref.dtype)


# --------------------------------- wrapper -----------------------------------

def resnet_block_forward(x_nchw, gamma, beta):
    """ResnetBlock(resnet_step=0) forward: training-mode BatchNorm2d + ReLU.

    x_nchw: (N, C, H, W);  gamma, beta: (C,)
    """
    N, C, H, W = x_nchw.shape
    L = H * W
    cfg = _hw_config()

    x3 = x_nchw.reshape(N, C, L)
    gamma3 = gamma.astype(jnp.float32).reshape(1, C, 1)
    beta3 = beta.astype(jnp.float32).reshape(1, C, 1)

    itemsize = x3.dtype.itemsize
    x_bytes = N * C * L * itemsize
    # VMEM footprint is padded to (8, 128) tiles on the last two dims.
    padded_x_bytes = N * _round_up(C, 8) * _round_up(L, 128) * itemsize

    if padded_x_bytes <= cfg["fused_max_x_bytes"]:
        # ---------- fused path: stats + normalize + ReLU, one HBM pass -------
        out3 = pl.pallas_call(
            _make_fused_kernel(N, L),
            out_shape=jax.ShapeDtypeStruct((N, C, L), x3.dtype),
            grid=(1,),
            in_specs=[
                pl.BlockSpec((N, C, L), lambda i: (0, 0, 0)),
                pl.BlockSpec((1, C, 1), lambda i: (0, 0, 0)),
                pl.BlockSpec((1, C, 1), lambda i: (0, 0, 0)),
            ],
            out_specs=pl.BlockSpec((N, C, L), lambda i: (0, 0, 0)),
            compiler_params=pltpu.CompilerParams(
                dimension_semantics=("arbitrary",),
                vmem_limit_bytes=cfg["vmem_limit_bytes"],
            ),
            cost_estimate=pl.CostEstimate(
                flops=6 * N * C * L,
                transcendentals=C,
                bytes_accessed=2 * x_bytes,
            ),
        )(x3, gamma3, beta3)
        return out3.reshape(N, C, H, W)

    # ------------- tiled path: lane-tiled stats + fused apply ---------------
    tl = _lane_tile(L, C, cfg["block_budget_elems"])
    lb = pl.cdiv(L, tl)

    # pass 1: per-(n, c) sum / sum-of-squares, accumulated over lane tiles.
    row_sum, row_sumsq = pl.pallas_call(
        _make_stats_kernel(L, tl),
        out_shape=(
            jax.ShapeDtypeStruct((N, C, 1), jnp.float32),
            jax.ShapeDtypeStruct((N, C, 1), jnp.float32),
        ),
        grid=(N, lb),
        in_specs=[pl.BlockSpec((1, C, tl), lambda n, j: (n, 0, j))],
        out_specs=(
            pl.BlockSpec((1, C, 1), lambda n, j: (n, 0, 0)),
            pl.BlockSpec((1, C, 1), lambda n, j: (n, 0, 0)),
        ),
        compiler_params=pltpu.CompilerParams(
            dimension_semantics=("parallel", "arbitrary"),
            vmem_limit_bytes=cfg["vmem_limit_bytes"],
        ),
        cost_estimate=pl.CostEstimate(
            flops=3 * N * C * L, transcendentals=0, bytes_accessed=x_bytes),
    )(x3)

    # tiny per-channel combine + scale/shift prep (a handful of C-sized ops;
    # the dispatch cost is negligible on the large activations this path serves).
    count = jnp.float32(N * L)
    ch_sum = jnp.sum(row_sum, axis=0)                    # (C, 1)
    ch_sumsq = jnp.sum(row_sumsq, axis=0)                # (C, 1)
    mean = ch_sum / count
    var = jnp.maximum(ch_sumsq / count - mean * mean, 0.0)
    inv_std = jax.lax.rsqrt(var + BN_EPS)
    scale_c = gamma.astype(jnp.float32).reshape(C, 1) * inv_std
    shift_c = beta.astype(jnp.float32).reshape(C, 1) - mean * scale_c
    scale3 = scale_c.reshape(1, C, 1)
    shift3 = shift_c.reshape(1, C, 1)

    # pass 2: fused normalize + ReLU, lane-dense output; params are tiny
    # constant-index (1, C, 1) blocks (fetched once, no per-row re-DMA).
    out3 = pl.pallas_call(
        _apply_kernel,
        out_shape=jax.ShapeDtypeStruct((N, C, L), x3.dtype),
        grid=(N, lb),
        in_specs=[
            pl.BlockSpec((1, C, tl), lambda n, j: (n, 0, j)),
            pl.BlockSpec((1, C, 1), lambda n, j: (0, 0, 0)),
            pl.BlockSpec((1, C, 1), lambda n, j: (0, 0, 0)),
        ],
        out_specs=pl.BlockSpec((1, C, tl), lambda n, j: (n, 0, j)),
        compiler_params=pltpu.CompilerParams(
            dimension_semantics=("parallel", "parallel"),
            vmem_limit_bytes=cfg["vmem_limit_bytes"],
        ),
        cost_estimate=pl.CostEstimate(
            flops=3 * N * C * L, transcendentals=C, bytes_accessed=2 * x_bytes),
    )(x3, scale3, shift3)

    return out3.reshape(N, C, H, W)


if __name__ == "__main__":
    key = jax.random.PRNGKey(0)
    k_x, k_g, k_b = jax.random.split(key, 3)

    N, C, H, W = 2, 4, 16, 16
    x = jax.random.normal(k_x, (N, C, H, W), dtype=jnp.float32)

    # PyTorch default init is gamma=1, beta=0; use nontrivial deterministic
    # values to exercise the affine path.
    gamma = 1.0 + 0.1 * jax.random.normal(k_g, (C,), dtype=jnp.float32)
    beta = 0.1 * jax.random.normal(k_b, (C,), dtype=jnp.float32)

    out = resnet_block_forward(x, gamma, beta)
    out = jax.block_until_ready(out)

    # sanity check vs. pure-JAX reference (training-mode BN + ReLU)
    mean = jnp.mean(x, axis=(0, 2, 3), keepdims=True)
    var = jnp.mean((x - mean) ** 2, axis=(0, 2, 3), keepdims=True)
    ref = (x - mean) * jax.lax.rsqrt(var + BN_EPS)
    ref = ref * gamma.reshape(1, C, 1, 1) + beta.reshape(1, C, 1, 1)
    ref = jnp.maximum(ref, 0.0)
    assert jnp.allclose(out, ref, atol=1e-5, rtol=1e-5), "mismatch vs reference"

    print("KERNEL_OK")
</pallas_src>

<mosaic_0001>
module attributes {stable_mosaic.version = 11 : i64} {
  func.func @kernel(%arg0: i32, %arg1: memref<2x4x256xf32, #tpu.memory_space<vmem>>, %arg2: memref<1x4x1xf32, #tpu.memory_space<vmem>>, %arg3: memref<1x4x1xf32, #tpu.memory_space<vmem>>, %arg4: memref<2x4x256xf32, #tpu.memory_space<vmem>>) attributes {dimension_semantics = [#tpu.dimension_semantics<arbitrary>], iteration_bounds = array<i64: 1>, scalar_prefetch = 0 : i64, scratch_operands = 0 : i64, tpu.core_type = #tpu.core_type<tc>, window_params = [{pipeline_mode = #tpu.pipeline_mode<synchronous>, transform_indices = @transform_0, window_bounds = array<i64: 2, 4, 256>}, {pipeline_mode = #tpu.pipeline_mode<synchronous>, transform_indices = @transform_1, window_bounds = array<i64: 1, 4, 1>}, {pipeline_mode = #tpu.pipeline_mode<synchronous>, transform_indices = @transform_2, window_bounds = array<i64: 1, 4, 1>}, {pipeline_mode = #tpu.pipeline_mode<synchronous>, transform_indices = @transform_3, window_bounds = array<i64: 2, 4, 256>}]} {
    %c0 = arith.constant 0 : index
    %c0_0 = arith.constant 0 : index
    %c0_1 = arith.constant 0 : index
    %0 = vector.load %arg1[%c0, %c0_0, %c0_1] : memref<2x4x256xf32, #tpu.memory_space<vmem>>, vector<2x4x256xf32>
    %cst = arith.constant dense<0.000000e+00> : vector<2x4xf32>
    %1 = vector.multi_reduction <add>, %0, %cst [2] : vector<2x4x256xf32> to vector<2x4xf32>
    %2 = vector.shape_cast %1 : vector<2x4xf32> to vector<2x4x1xf32>
    %3 = arith.mulf %0, %0 : vector<2x4x256xf32>
    %cst_2 = arith.constant dense<0.000000e+00> : vector<2x4xf32>
    %4 = vector.multi_reduction <add>, %3, %cst_2 [2] : vector<2x4x256xf32> to vector<2x4xf32>
    %5 = vector.shape_cast %4 : vector<2x4xf32> to vector<2x4x1xf32>
    %cst_3 = arith.constant dense<0.000000e+00> : vector<4x1xf32>
    %6 = vector.multi_reduction <add>, %2, %cst_3 [0] : vector<2x4x1xf32> to vector<4x1xf32>
    %7 = vector.shape_cast %6 : vector<4x1xf32> to vector<1x4x1xf32>
    %cst_4 = arith.constant dense<0.000000e+00> : vector<4x1xf32>
    %8 = vector.multi_reduction <add>, %5, %cst_4 [0] : vector<2x4x1xf32> to vector<4x1xf32>
    %9 = vector.shape_cast %8 : vector<4x1xf32> to vector<1x4x1xf32>
    %cst_5 = arith.constant 0.001953125 : f32
    %10 = vector.broadcast %cst_5 : f32 to vector<1x4x1xf32>
    %11 = arith.mulf %7, %10 : vector<1x4x1xf32>
    %cst_6 = arith.constant 0.001953125 : f32
    %12 = vector.broadcast %cst_6 : f32 to vector<1x4x1xf32>
    %13 = arith.mulf %9, %12 : vector<1x4x1xf32>
    %14 = arith.mulf %11, %11 : vector<1x4x1xf32>
    %15 = arith.subf %13, %14 : vector<1x4x1xf32>
    %cst_7 = arith.constant 0.000000e+00 : f32
    %16 = vector.broadcast %cst_7 : f32 to vector<1x4x1xf32>
    %17 = arith.maximumf %15, %16 : vector<1x4x1xf32>
    %cst_8 = arith.constant 9.99999974E-6 : f32
    %18 = vector.broadcast %cst_8 : f32 to vector<1x4x1xf32>
    %19 = arith.addf %17, %18 : vector<1x4x1xf32>
    %20 = math.rsqrt %19 : vector<1x4x1xf32>
    %c0_9 = arith.constant 0 : index
    %c0_10 = arith.constant 0 : index
    %c0_11 = arith.constant 0 : index
    %21 = vector.load %arg2[%c0_9, %c0_10, %c0_11] : memref<1x4x1xf32, #tpu.memory_space<vmem>>, vector<1x4x1xf32>
    %22 = arith.mulf %21, %20 : vector<1x4x1xf32>
    %c0_12 = arith.constant 0 : index
    %c0_13 = arith.constant 0 : index
    %c0_14 = arith.constant 0 : index
    %23 = vector.load %arg3[%c0_12, %c0_13, %c0_14] : memref<1x4x1xf32, #tpu.memory_space<vmem>>, vector<1x4x1xf32>
    %24 = arith.mulf %11, %22 : vector<1x4x1xf32>
    %25 = arith.subf %23, %24 : vector<1x4x1xf32>
    %26 = vector.broadcast %22 : vector<1x4x1xf32> to vector<2x4x256xf32>
    %27 = arith.mulf %0, %26 : vector<2x4x256xf32>
    %28 = vector.broadcast %25 : vector<1x4x1xf32> to vector<2x4x256xf32>
    %29 = arith.addf %27, %28 : vector<2x4x256xf32>
    %cst_15 = arith.constant 0.000000e+00 : f32
    %30 = vector.broadcast %cst_15 : f32 to vector<2x4x256xf32>
    %31 = arith.maximumf %29, %30 : vector<2x4x256xf32>
    %c0_16 = arith.constant 0 : index
    %c0_17 = arith.constant 0 : index
    %c0_18 = arith.constant 0 : index
    %32 = vector.load %arg4[%c0_16, %c0_17, %c0_18] : memref<2x4x256xf32, #tpu.memory_space<vmem>>, vector<2x4x256xf32>
    tpu.vector_store %arg4[%c0_16, %c0_17, %c0_18], %31 {strides = array<i32>} : memref<2x4x256xf32, #tpu.memory_space<vmem>>, vector<2x4x256xf32>,
    return
  }
  func.func @transform_0(%arg0: i32) -> (i32, i32, i32) {
    %c0_i32 = arith.constant 0 : i32
    %c0_i32_0 = arith.constant 0 : i32
    %c0_i32_1 = arith.constant 0 : i32
    %c0_i32_2 = arith.constant 0 : i32
    return %c0_i32, %c0_i32_0, %c0_i32_1 : i32, i32, i32
  }
  func.func @transform_1(%arg0: i32) -> (i32, i32, i32) {
    %c0_i32 = arith.constant 0 : i32
    %c0_i32_0 = arith.constant 0 : i32
    %c0_i32_1 = arith.constant 0 : i32
    %c0_i32_2 = arith.constant 0 : i32
    return %c0_i32, %c0_i32_0, %c0_i32_1 : i32, i32, i32
  }
  func.func @transform_2(%arg0: i32) -> (i32, i32, i32) {
    %c0_i32 = arith.constant 0 : i32
    %c0_i32_0 = arith.constant 0 : i32
    %c0_i32_1 = arith.constant 0 : i32
    %c0_i32_2 = arith.constant 0 : i32
    return %c0_i32, %c0_i32_0, %c0_i32_1 : i32, i32, i32
  }
  func.func @transform_3(%arg0: i32) -> (i32, i32, i32) {
    %c0_i32 = arith.constant 0 : i32
    %c0_i32_0 = arith.constant 0 : i32
    %c0_i32_1 = arith.constant 0 : i32
    %c0_i32_2 = arith.constant 0 : i32
    return %c0_i32, %c0_i32_0, %c0_i32_1 : i32, i32, i32
  }
}

</mosaic_0001>

<bundles_post_ra>
// kernel: tpu_custom_call.1
= control target key start
LH: loop header
LB: loop body
LE: loop exit
PB: predicated region body
PF: predicated region fallthrough
CT: control target
= control target key end

     0   :  { %8 = vsyncpa [#allocation3], 0  ;;  %s284_s0 = inlined_call_operand.hbm [shape: f32[2,4,256], index: 0, kind: input, shape index: {}]   ;;  %s285_s1 = inlined_call_operand.vmem [shape: f32[1,4,1], index: 1, kind: input, shape index: {}]   ;;  %s286_s2 = inlined_call_operand.vmem [shape: f32[1,4,1], index: 2, kind: input, shape index: {}]   ;;  %s287_s3 = inlined_call_operand.hbm [shape: f32[2,4,256], index: 3, kind: output, shape index: {}]  }
   0x1   :  { %9 = vsyncpa [#allocation4], 0  ;;  %s14_s14 = sshll.u32 %s284_s0, 4  ;;  %s216_s15 = smov [#allocation2]   ;;  %s15_s14 = int_to_ptr.hbm [resolvable:$true] %s14_s14 }
   0x2   :  { %s16_s16 = sshll.u32 %s216_s15, 4  ;;  %s217_s17 = smov 128   ;;  %s17_s16 = int_to_ptr.vmem [resolvable:$true] %s16_s16 }
   0x3   :  { %s218_s18 = smov 8  }
   0x4   :  { %22 = dma.hbm_to_vmem [thread:$0]  %s15_s14, 256, %s17_s16, [#allocation3], %s217_s17, %s217_s17, %s218_s18  }
   0x5   :  { %212 = dma.done.wait [#allocation3], 256  }
   0x6   :  { %213 = vsyncadd [#allocation3], 4294967040  ;;  %v248_v0 = vld [vmem:[#allocation2] sm:$0xff]  ;;  %v250_v1 = vld [vmem:[#allocation2 + $0x8] sm:$0xff]  ;;  %vm46_vm0 = vcmask 1043456   ;;  %v219_v25 = vmov 0  }
   0x7   :  { %35 = vst [vmem:[#allocation1] ss:$2 sm:$0xff] %v248_v0  ;;  %v57_v2 = vmul.f32 %v248_v0, %v248_v0  ;;  %v58_v3 = vmul.f32 %v250_v1, %v250_v1  ;;  %160 = vset.pattern.permute.xlu2 %v219_v25  ;;  %161 = vset.pattern.permute.xlu0 %v219_v25  ;;  %v104_v47 = vld [vmem:[%s285_s1] sm:$0xf]  ;;  %v220_v53 = vmov 839922192  }
   0x8   :  { %39 = vst [vmem:[#allocation1 + $0x10] ss:$2 sm:$0xff] %v250_v1  ;;  %v106_v51 = vld [vmem:[%s286_s2] sm:$0xf]  ;;  %v114_v54 = vunpack.c.l.s4 %v220_v53  ;;  %s221_s1 = smov [#allocation5]   ;;  %s141_s2 = sshll.u32 %s287_s3, 4  ;;  %s142_s2 = int_to_ptr.hbm [resolvable:$true] %s141_s2 }
   0x9   :  { %s139_s22 = sshll.u32 %s221_s1, 4  ;;  %s140_s22 = int_to_ptr.vmem [resolvable:$true] %s139_s22 }
   0xa   :  { %v115_v56 = vunpack.c.0.s8 %v114_v54 }
   0xe   :  { %v36_v4 = vld.sshfl [vmem:[#allocation1] sm:$0xff pattern:$0x75316420]  ;;  %v37_v5 = vld.sshfl [vmem:[#allocation1 + $0x8] sm:$0xff pattern:$0x75316420] }
   0xf   :  { %v47_v6 = vsel %vm46_vm0, %v36_v4, 0.0  ;;  %v48_v7 = vsel %vm46_vm0, %v37_v5, 0.0  ;;  %61 = vst [vmem:[#allocation1] ss:$2 sm:$0xff] %v57_v2 }
  0x10   :  { %v49_v8 = vadd.f32 %v48_v7, %v47_v6  ;;  %v40_v9 = vld.sshfl [vmem:[#allocation1 + $0x10] sm:$0xff pattern:$0x75316420]  ;;  %v41_v10 = vld.sshfl [vmem:[#allocation1 + $0x18] sm:$0xff pattern:$0x75316420] }
  0x11   :  { %65 = vst [vmem:[#allocation1 + $0x10] ss:$2 sm:$0xff] %v58_v3  ;;  %v52_v11 = vsel %vm46_vm0, %v40_v9, 0.0  ;;  %v53_v12 = vsel %vm46_vm0, %v41_v10, 0.0 }
  0x12   :  { %50 = vadd.xlane.f32.xlu0 %v49_v8  ;;  %v54_v15 = vadd.f32 %v53_v12, %v52_v11 }
  0x16   :  { %v62_v13 = vld.sshfl [vmem:[#allocation1] sm:$0xff pattern:$0x75316420]  ;;  %v63_v14 = vld.sshfl [vmem:[#allocation1 + $0x8] sm:$0xff pattern:$0x75316420] }
  0x17   :  { %v72_v16 = vsel %vm46_vm0, %v62_v13, 0.0  ;;  %v73_v17 = vsel %vm46_vm0, %v63_v14, 0.0 }
  0x18   :  { %v74_v18 = vadd.f32 %v73_v17, %v72_v16  ;;  %v66_v19 = vld.sshfl [vmem:[#allocation1 + $0x10] sm:$0xff pattern:$0x75316420]  ;;  %v67_v20 = vld.sshfl [vmem:[#allocation1 + $0x18] sm:$0xff pattern:$0x75316420] }
  0x19   :  { %v77_v21 = vsel %vm46_vm0, %v66_v19, 0.0  ;;  %v78_v22 = vsel %vm46_vm0, %v67_v20, 0.0 }
  0x1a   :  { %75 = vadd.xlane.f32.xlu1 %v74_v18  ;;  %55 = vadd.xlane.f32.xlu0 %v54_v15  ;;  %v79_v23 = vadd.f32 %v78_v22, %v77_v21 }
  0x22   :  { %80 = vadd.xlane.f32.xlu1 %v79_v23 }
  0x85   :  { %v51_v24 = vpop.xlane.xlu0 %50 }
  0x86   :  { %v82_v29 = vsel %vm46_vm0, %v51_v24, 0.0 }
  0x8d   :  { %v76_v26 = vpop.xlane.xlu1 %75  ;;  %v56_v27 = vpop.xlane.xlu0 %55 }
  0x8e   :  { %v83_v28 = vsel %vm46_vm0, %v56_v27, 0.0  ;;  %v85_v33 = vsel %vm46_vm0, %v76_v26, 0.0 }
  0x8f   :  { %v84_v30 = vadd.f32 %v83_v28, %v82_v29 }
  0x91   :  { %v88_v31 = vmul.f32 0.001953125, %v84_v30 }
  0x93   :  { %v90_v36 = vmul.f32 %v88_v31, %v88_v31 }
  0x95   :  { %v81_v32 = vpop.xlane.xlu1 %80 }
  0x96   :  { %v86_v34 = vsel %vm46_vm0, %v81_v32, 0.0 }
  0x97   :  { %v87_v35 = vadd.f32 %v86_v34, %v85_v33 }
  0x99   :  { %v89_v37 = vmul.f32 0.001953125, %v87_v35 }
  0x9b   :  { %v91_v38 = vsub.f32 %v89_v37, %v90_v36 }
  0x9d   :  { %v92_v39 = vmax.f32 %v91_v38, 0.0 }
  0x9f   :  { %v93_v40 = vadd.f32 1e-05, %v92_v39 }
  0xa1   :  { %162 = vrsqrt.f32 %v93_v40  ;;  %vm100_vm2 = vweird.f32 %v93_v40 }
  0xa7   :  { %v163_v41 = vpop.eup %162 }
  0xa8   :  { %v95_v42 = vmul.f32 %v163_v41, %v93_v40  ;;  %vm101_vm1 = vweird.f32 %v163_v41 }
  0xa9   :  { %vm102_vm3 = vmor %vm100_vm2, %vm101_vm1 }
  0xaa   :  { %v96_v43 = vmul.f32 %v163_v41, %v95_v42 }
  0xac   :  { %v97_v44 = vmul.f32 0.5, %v96_v43 }
  0xae   :  { %v98_v45 = vsub.f32 1.5, %v97_v44 }
  0xb0   :  { %v99_v46 = vmul.f32 %v163_v41, %v98_v45 }
  0xb2   :  { %v103_v48 = vsel %vm102_vm3, %v163_v41, %v99_v46 }
  0xb3   :  { %v105_v49 = vmul.f32 %v104_v47, %v103_v48 }
  0xb5   :  { %111 = vperm.xlu2 %160, %v105_v49   ;;  %v107_v50 = vmul.f32 %v105_v49, %v88_v31 }
  0xb7   :  { %v108_v52 = vsub.f32 %v106_v51, %v107_v50 }
  0xbd   :  { %122 = vperm.xlu2 %160, %v108_v52  }
 0x10f   :  { %v112_v55 = vpop.permute.xlu2 %111 }
 0x110   :  { %v116_v57 = vperm.slane %v112_v55, %v115_v56 }
 0x112   :  { %v118_v59 = vmul.f32 %v116_v57, %v248_v0  ;;  %v119_v60 = vmul.f32 %v116_v57, %v250_v1 }
 0x117   :  { %v123_v58 = vpop.permute.xlu2 %122 }
 0x118   :  { %v127_v61 = vperm.slane %v123_v58, %v115_v56 }
 0x11a   :  { %v129_v62 = vadd.f32 %v127_v61, %v118_v59  ;;  %v130_v63 = vadd.f32 %v127_v61, %v119_v60 }
 0x11c   :  { %v131_v2 = vmax.f32 %v129_v62, 0.0  ;;  %v132_v3 = vmax.f32 %v130_v63, 0.0 }
 0x11e   :  { %133 = vst [vmem:[#allocation5] sm:$0xff] %v131_v2 }
 0x11f   :  { %134 = vst [vmem:[#allocation5 + $0x8] sm:$0xff] %v132_v3 }
 0x120   :  { %147 = dma.vmem_to_hbm [thread:$0]  %s140_s22, 256, %s142_s2, [#allocation4], %s217_s17, %s217_s17, %s218_s18  }
 0x121   :  { %214 = dma.done.wait [#allocation4], 256  }
 0x122   :  { %215 = vsyncadd [#allocation4], 4294967040 }
 0x123   :  { %152 = vsyncpa [#allocation3], 1 }
 0x124   :  { %153 = vsyncpa [#allocation4], 1 }

</bundles_post_ra>
